<compile_context>
chip_gen: v5e
topology: v5e:2x2
jax: 0.10.0
libtpu: 0.0.40
codegen_flags: <defaults>
</compile_context>

<pallas_src>
import functools
import math

import jax
import jax.numpy as jnp
from jax.experimental import pallas as pl
from jax.experimental.pallas import tpu as pltpu


# ----------------------------- VMEM budgeting ------------------------------ #

@functools.lru_cache(maxsize=None)
def _vmem_capacity():
    try:
        return int(pltpu.get_tpu_info().vmem_capacity_bytes)
    except Exception:
        return 64 << 20  # conservative (v7x-sized) fallback


def _mosaic_params(semantics, vmem_need_bytes):
    cap = min(_vmem_capacity(), 128 << 20)
    limit = int(min(max(32 << 20, 2 * vmem_need_bytes + (4 << 20)), cap))
    return pltpu.CompilerParams(dimension_semantics=semantics,
                                vmem_limit_bytes=limit)


# ----------------------------- linear (matmul+bias) ------------------------ #

def _linear_kernel(x_ref, w_ref, b_ref, o_ref):
    # x: (TM, Kin) f32/bf16, w: (Kin, TN) bf16 (pre-cast in wrapper), b: (1, TN) f32.
    x = x_ref[...].astype(jnp.bfloat16)        # no-op when the input is already bf16
    acc = jnp.dot(x, w_ref[...], preferred_element_type=jnp.float32)
    o_ref[...] = (acc + b_ref[...]).astype(o_ref.dtype)


def _linear_vmem_need(tm, kin, tn, x_bytes, out_bytes):
    # double-buffered blocks: x, bf16 weight, f32 bias, output
    return (2 * tm * kin * x_bytes + 2 * kin * tn * 2
            + 2 * tn * 4 + 2 * tm * tn * out_bytes)


def _pick_linear_tiles(M, Kin, Kout, x_bytes, out_bytes):
    cap = _vmem_capacity()
    budget = min(cap, 128 << 20) // 2
    tm = 512 if cap >= (96 << 20) else 256      # bigger row tiles on 128 MiB parts
    tm = min(tm, M)
    tn = min(512, Kout)                         # multiple of 256 -> fills 256x256 MXU
    while _linear_vmem_need(tm, Kin, tn, x_bytes, out_bytes) > budget:
        if tm > 64:
            tm = max(64, (tm // 2) // 8 * 8)
        elif tn > 256:
            tn = max(256, (tn // 2) // 128 * 128)
        else:
            break
    return tm, tn


def _linear(x2d, w_bf16, b_f32, out_dtype=jnp.float32):
    """y = x2d @ w + b, tiled over rows and output columns.

    Grid is (N tiles, M tiles) with the N axis outermost so the weight block is not
    re-DMAed across the inner row loop; both axes are "parallel" for megacore."""
    M, Kin = x2d.shape
    Kout = w_bf16.shape[1]
    x_bytes = x2d.dtype.itemsize
    out_bytes = jnp.dtype(out_dtype).itemsize
    TM, TN = _pick_linear_tiles(M, Kin, Kout, x_bytes, out_bytes)
    need = _linear_vmem_need(TM, Kin, TN, x_bytes, out_bytes)

    cost = pl.CostEstimate(
        flops=2 * M * Kin * Kout,
        transcendentals=0,
        bytes_accessed=(M * Kin * x_bytes + Kin * Kout * 2 + Kout * 4
                        + M * Kout * out_bytes))

    return pl.pallas_call(
        _linear_kernel,
        out_shape=jax.ShapeDtypeStruct((M, Kout), out_dtype),
        grid=(pl.cdiv(Kout, TN), pl.cdiv(M, TM)),
        in_specs=[
            pl.BlockSpec((TM, Kin), lambda j, i: (i, 0)),
            pl.BlockSpec((Kin, TN), lambda j, i: (0, j)),
            pl.BlockSpec((1, TN), lambda j, i: (0, j)),
        ],
        out_specs=pl.BlockSpec((TM, TN), lambda j, i: (i, j)),
        compiler_params=_mosaic_params(("parallel", "parallel"), need),
        cost_estimate=cost,
    )(x2d, w_bf16, b_f32.reshape(1, Kout))


# ------------------------------- attention core ----------------------------- #

def _mha_kernel(*refs, n_heads, has_mask):
    if has_mask:
        q_ref, k_ref, v_ref, mask_ref, o_ref, attn_ref = refs
    else:
        q_ref, k_ref, v_ref, o_ref, attn_ref = refs
        mask_ref = None

    q = q_ref[...]          # (TQ, H)  bf16 (1/sqrt(d) already folded into fc_q)
    k = k_ref[...]          # (Lk, H)  bf16
    v = v_ref[...]          # (Lk, H)  bf16

    keep = None
    if has_mask:
        # (TQ, Lk) or (1, Lk) int8 -> bool; (1, Lk) broadcasts over query rows for free.
        keep = mask_ref[...] != 0

    H = q.shape[-1]
    D = H // n_heads

    # Heads live on the lane axis; per-head lane slices are cheap at these widths.
    # TODO(synk): for large n_heads with D % 128 != 0, a head-batched dot_general
    # (one relayout per operand) would beat 3*n_heads lane-slice relayouts.
    for h in range(n_heads):
        lo = h * D
        qh = q[:, lo:lo + D]                 # (TQ, D)
        kh = k[:, lo:lo + D]                 # (Lk, D)
        vh = v[:, lo:lo + D]                 # (Lk, D)

        # QK^T without an explicit transpose: contract the last dim of both.
        energy = jax.lax.dot_general(
            qh, kh, (((1,), (1,)), ((), ())),
            preferred_element_type=jnp.float32)          # (TQ, Lk) f32

        if has_mask:
            energy = jnp.where(keep, energy, jnp.float32(-1e10))

        # softmax in f32; exact reciprocal on the (TQ, 1) denom is ~free and keeps
        # the user-visible attention rows summing to 1.
        m = jnp.max(energy, axis=-1, keepdims=True)
        e = jnp.exp(energy - m)
        denom = jnp.sum(e, axis=-1, keepdims=True)
        attn = e * pl.reciprocal(denom, approx=False)    # (TQ, Lk)

        attn_ref[h] = attn.astype(attn_ref.dtype)

        ctx_h = jnp.dot(attn.astype(jnp.bfloat16), vh,
                        preferred_element_type=jnp.float32)   # (TQ, D) f32
        # Write straight into the head's lane slice of the output block: no live list
        # of per-head tiles, no final concatenate; HBM store stays one dense DMA.
        o_ref[:, lo:lo + D] = ctx_h.astype(o_ref.dtype)


def _attn_vmem_need(tq, Lk, H, n_heads, has_mask, mask_q_bcast, attn_bytes):
    need = 2 * (tq * H * 2)                  # Q block (bf16, double-buffered)
    need += 2 * 2 * (Lk * H * 2)             # K and V blocks
    if has_mask:
        need += 2 * ((1 if mask_q_bcast else tq) * Lk)   # int8 mask block
    need += 2 * (tq * H * 2)                 # ctx output block (bf16)
    need += 2 * (n_heads * tq * Lk * attn_bytes)          # attention-weights block
    return need


def _pick_tile_q(Lq, Lk, H, n_heads, has_mask, mask_q_bcast, attn_bytes):
    cap = _vmem_capacity()
    budget = min(cap, 128 << 20) // 2
    tq = 256 if cap >= (96 << 20) else 128   # 256 on 128 MiB parts, 128 on v7x 64 MiB
    tq = min(tq, Lq)
    while tq > 8 and _attn_vmem_need(tq, Lk, H, n_heads, has_mask,
                                     mask_q_bcast, attn_bytes) > budget:
        tq = max(8, (tq // 2) // 8 * 8)
    return tq


def _attention(Q, K, V, mask3, *, n_heads, attn_dtype):
    # Q: (B, Lq, H) bf16, K/V: (B, Lk, H) bf16, mask3: (Bm, Lq|1, Lk) int8 or None.
    B, Lq, H = Q.shape
    Lk = K.shape[1]
    D = H // n_heads
    attn_bytes = jnp.dtype(attn_dtype).itemsize

    has_mask = mask3 is not None
    mask_b_bcast = has_mask and mask3.shape[0] == 1
    mask_q_bcast = has_mask and mask3.shape[1] == 1

    TQ = _pick_tile_q(Lq, Lk, H, n_heads, has_mask, mask_q_bcast, attn_bytes)
    need = _attn_vmem_need(TQ, Lk, H, n_heads, has_mask, mask_q_bcast, attn_bytes)

    kernel = functools.partial(_mha_kernel, n_heads=n_heads, has_mask=has_mask)

    in_specs = [
        pl.BlockSpec((None, TQ, H), lambda b, qi: (b, qi, 0)),
        pl.BlockSpec((None, Lk, H), lambda b, qi: (b, 0, 0)),
        pl.BlockSpec((None, Lk, H), lambda b, qi: (b, 0, 0)),
    ]
    args = [Q, K, V]
    if has_mask:
        mq = 1 if mask_q_bcast else TQ

        def mask_map(b, qi, _bb=mask_b_bcast, _qb=mask_q_bcast):
            return (0 if _bb else b, 0 if _qb else qi, 0)

        in_specs.append(pl.BlockSpec((None, mq, Lk), mask_map))
        args.append(mask3)

    cost = pl.CostEstimate(
        flops=4 * B * n_heads * Lq * Lk * D,          # QK^T + PV
        transcendentals=B * n_heads * Lq * Lk,        # exp
        bytes_accessed=(B * (Lq + 2 * Lk) * H * 2
                        + (int(mask3.size) if has_mask else 0)
                        + B * Lq * H * 2
                        + B * n_heads * Lq * Lk * attn_bytes))

    ctx, attn = pl.pallas_call(
        kernel,
        out_shape=(
            jax.ShapeDtypeStruct((B, Lq, H), jnp.bfloat16),       # lane-dense ctx
            jax.ShapeDtypeStruct((B, n_heads, Lq, Lk), attn_dtype),
        ),
        grid=(B, pl.cdiv(Lq, TQ)),
        in_specs=in_specs,
        out_specs=(
            pl.BlockSpec((None, TQ, H), lambda b, qi: (b, qi, 0)),
            pl.BlockSpec((None, n_heads, TQ, Lk), lambda b, qi: (b, 0, qi, 0)),
        ),
        compiler_params=_mosaic_params(("parallel", "parallel"), need),
        cost_estimate=cost,
    )(*args)
    return ctx, attn


# --------------------------- module-level wrapper --------------------------- #

def init_params(key, hid_dim):
    ks = jax.random.split(key, 8)
    s = 1.0 / math.sqrt(hid_dim)

    def lin(kw, kb):
        w = jax.random.uniform(kw, (hid_dim, hid_dim), jnp.float32, -s, s)
        b = jax.random.uniform(kb, (hid_dim,), jnp.float32, -s, s)
        return w, b

    return {
        "fc_q": lin(ks[0], ks[1]),
        "fc_k": lin(ks[2], ks[3]),
        "fc_v": lin(ks[4], ks[5]),
        "fc_o": lin(ks[6], ks[7]),
    }


def _prepare_mask(mask, Lq, Lk):
    """Keep the mask at its natural batch shape, drop the head axis, cast to int8.
    Padding masks keep their size-1 Lq dim (broadcast happens in-kernel); batch/head
    broadcasting happens via the BlockSpec index_map."""
    if mask is None:
        return None
    m = jnp.asarray(mask)
    while m.ndim < 4:
        m = m[None]
    if m.shape[1] != 1:
        # TODO(synk): per-head masks would need an explicit head axis in the kernel.
        raise NotImplementedError("per-head masks are not supported")
    m = m[:, 0]                                        # (Bm, lq, lk)
    bm, lq, lk = m.shape
    if lq not in (1, Lq) or lk not in (1, Lk):
        raise ValueError("mask shape incompatible with (Lq, Lk)")
    if lk != Lk:
        m = jnp.broadcast_to(m, (bm, lq, Lk))
    return m.astype(jnp.int8)


def multi_head_attention(params, query, key, value, mask=None,
                         *, n_heads, atten_type="multiplicative",
                         attn_dtype=jnp.bfloat16):
    B, Lq, H = query.shape
    Lk = key.shape[1]
    head_dim = H // n_heads

    wq, bq = params["fc_q"]
    if atten_type == "multiplicative":
        # Fold 1/sqrt(d) into the fc_q weight/bias: one-time O(H^2) op (constant-folds
        # under jit); removes per-head scaling + casts from the attention hot loop.
        inv_scale = jnp.float32(1.0 / math.sqrt(head_dim))
        wq = wq * inv_scale
        bq = bq * inv_scale
    elif atten_type != "general":
        # TODO(synk): 'additive' attention is not lowered to Pallas.
        raise NotImplementedError("only 'multiplicative' and 'general' are implemented")

    # Pre-cast weights to bf16 once (halves weight DMA / VMEM block, drops the
    # per-step in-kernel cast). Biases stay f32 and are added on the f32 accumulator.
    bf = lambda w: w.astype(jnp.bfloat16)

    # Projections. fc_q/fc_k/fc_v are kept as separate calls (not a fused (H, 3H)
    # matmul) because query/key/value may be different tensors (cross-attention).
    Q = _linear(query.reshape(B * Lq, H), bf(wq), bq,
                out_dtype=jnp.bfloat16).reshape(B, Lq, H)
    K = _linear(key.reshape(B * Lk, H), bf(params["fc_k"][0]), params["fc_k"][1],
                out_dtype=jnp.bfloat16).reshape(B, Lk, H)
    V = _linear(value.reshape(B * Lk, H), bf(params["fc_v"][0]), params["fc_v"][1],
                out_dtype=jnp.bfloat16).reshape(B, Lk, H)

    mask3 = _prepare_mask(mask, Lq, Lk)

    ctx, attention = _attention(Q, K, V, mask3, n_heads=n_heads, attn_dtype=attn_dtype)

    # ctx is already (B, Lq, H) with heads merged on the lane axis: no transpose,
    # straight into the output projection.
    out = _linear(ctx.reshape(B * Lq, H), bf(params["fc_o"][0]), params["fc_o"][1],
                  out_dtype=jnp.float32).reshape(B, Lq, H)
    return out, attention


# --------------------------------- test ------------------------------------ #

def _reference(params, query, key, value, mask, n_heads, atten_type):
    B, Lq, H = query.shape
    Lk = key.shape[1]
    D = H // n_heads

    def lin(x, wb):
        return x @ wb[0] + wb[1]

    Q = lin(query, params["fc_q"]).reshape(B, Lq, n_heads, D).transpose(0, 2, 1, 3)
    K = lin(key, params["fc_k"]).reshape(B, Lk, n_heads, D).transpose(0, 2, 1, 3)
    V = lin(value, params["fc_v"]).reshape(B, Lk, n_heads, D).transpose(0, 2, 1, 3)
    energy = jnp.einsum("bhqd,bhkd->bhqk", Q, K)
    if atten_type == "multiplicative":
        energy = energy / math.sqrt(D)
    if mask is not None:
        energy = jnp.where(mask == 0, -1e10, energy)
    attn = jax.nn.softmax(energy, axis=-1)
    ctxr = jnp.einsum("bhqk,bhkd->bhqd", attn, V)
    x = ctxr.transpose(0, 2, 1, 3).reshape(B, Lq, H)
    return lin(x, params["fc_o"]), attn


if __name__ == "__main__":
    B, L, HID, NH = 2, 8, 32, 4

    root = jax.random.PRNGKey(0)
    kp, kq, kk, kv = jax.random.split(root, 4)
    params = init_params(kp, HID)
    query = jax.random.normal(kq, (B, L, HID), jnp.float32)
    key = jax.random.normal(kk, (B, L, HID), jnp.float32)
    value = jax.random.normal(kv, (B, L, HID), jnp.float32)

    # causal mask, PyTorch masked_fill convention (1 = keep, 0 = masked)
    mask = jnp.tril(jnp.ones((L, L), jnp.float32))[None, None, :, :]

    # masked, multiplicative (scaled) attention
    out, attn = multi_head_attention(params, query, key, value, mask,
                                     n_heads=NH, atten_type="multiplicative")
    out = jax.block_until_ready(out)
    attn = jax.block_until_ready(attn)

    ref_out, ref_attn = _reference(params, query, key, value, mask, NH, "multiplicative")
    assert out.shape == (B, L, HID) and attn.shape == (B, NH, L, L)
    # bf16 MXU inputs + bf16 attention output => loose-but-meaningful tolerances.
    assert jnp.allclose(out, ref_out, atol=1e-1, rtol=1e-1), \
        float(jnp.max(jnp.abs(out - ref_out)))
    assert jnp.allclose(attn, ref_attn, atol=3e-2, rtol=3e-2), \
        float(jnp.max(jnp.abs(attn.astype(jnp.float32) - ref_attn)))

    # padding-style mask (size-1 Lq dim): exercises the un-broadcast in-kernel path
    pad_mask = jnp.array([[1, 1, 1, 1, 1, 1, 1, 1],
                          [1, 1, 1, 1, 1, 0, 0, 0]], jnp.float32)[:, None, None, :]
    out_p, attn_p = multi_head_attention(params, query, key, value, pad_mask,
                                         n_heads=NH, atten_type="multiplicative")
    out_p = jax.block_until_ready(out_p)
    attn_p = jax.block_until_ready(attn_p)
    ref_out_p, ref_attn_p = _reference(params, query, key, value, pad_mask, NH,
                                       "multiplicative")
    assert jnp.allclose(out_p, ref_out_p, atol=1e-1, rtol=1e-1)
    assert jnp.allclose(attn_p, ref_attn_p, atol=3e-2, rtol=3e-2)

    # unmasked, 'general' (unscaled) attention path
    out_g, attn_g = multi_head_attention(params, query, key, value, None,
                                         n_heads=NH, atten_type="general")
    out_g = jax.block_until_ready(out_g)
    attn_g = jax.block_until_ready(attn_g)
    ref_out_g, ref_attn_g = _reference(params, query, key, value, None, NH, "general")
    assert jnp.allclose(out_g, ref_out_g, atol=1e-1, rtol=1e-1)
    assert jnp.allclose(attn_g, ref_attn_g, atol=3e-2, rtol=3e-2)

    print("KERNEL_OK")
</pallas_src>

<mosaic_0001>
module attributes {stable_mosaic.version = 11 : i64} {
  func.func @_linear_kernel(%arg0: i32, %arg1: i32, %arg2: memref<16x32xf32, #tpu.memory_space<vmem>>, %arg3: memref<32x32xbf16, #tpu.memory_space<vmem>>, %arg4: memref<1x32xf32, #tpu.memory_space<vmem>>, %arg5: memref<16x32xbf16, #tpu.memory_space<vmem>>) attributes {dimension_semantics = [#tpu.dimension_semantics<parallel>, #tpu.dimension_semantics<parallel>], iteration_bounds = array<i64: 1, 1>, scalar_prefetch = 0 : i64, scratch_operands = 0 : i64, tpu.core_type = #tpu.core_type<tc>, window_params = [{transform_indices = @transform_0, window_bounds = array<i64: 16, 32>}, {transform_indices = @transform_1, window_bounds = array<i64: 32, 32>}, {transform_indices = @transform_2, window_bounds = array<i64: 1, 32>}, {transform_indices = @transform_3, window_bounds = array<i64: 16, 32>}]} {
    %c0 = arith.constant 0 : index
    %c0_0 = arith.constant 0 : index
    %0 = vector.load %arg2[%c0, %c0_0] : memref<16x32xf32, #tpu.memory_space<vmem>>, vector<16x32xf32>
    %1 = arith.truncf %0 : vector<16x32xf32> to vector<16x32xbf16>
    %c0_1 = arith.constant 0 : index
    %c0_2 = arith.constant 0 : index
    %2 = vector.load %arg3[%c0_1, %c0_2] : memref<32x32xbf16, #tpu.memory_space<vmem>>, vector<32x32xbf16>
    %cst = arith.constant dense<0.000000e+00> : vector<16x32xf32>
    %3 = tpu.matmul %1, %2, %cst {dimension_numbers = #tpu.dot_dimension_numbers<[1], [0], [0], [1], [0, 0, 1, 1], [], []>} : vector<16x32xbf16>, vector<32x32xbf16>, vector<16x32xf32> -> vector<16x32xf32>
    %c0_3 = arith.constant 0 : index
    %c0_4 = arith.constant 0 : index
    %4 = vector.load %arg4[%c0_3, %c0_4] : memref<1x32xf32, #tpu.memory_space<vmem>>, vector<1x32xf32>
    %5 = vector.broadcast %4 : vector<1x32xf32> to vector<16x32xf32>
    %6 = arith.addf %3, %5 : vector<16x32xf32>
    %7 = arith.truncf %6 : vector<16x32xf32> to vector<16x32xbf16>
    %c0_5 = arith.constant 0 : index
    %c0_6 = arith.constant 0 : index
    %8 = vector.load %arg5[%c0_5, %c0_6] : memref<16x32xbf16, #tpu.memory_space<vmem>>, vector<16x32xbf16>
    tpu.vector_store %arg5[%c0_5, %c0_6], %7 {strides = array<i32>} : memref<16x32xbf16, #tpu.memory_space<vmem>>, vector<16x32xbf16>,
    return
  }
  func.func @transform_0(%arg0: i32, %arg1: i32) -> (i32, i32) {
    %c0_i32 = arith.constant 0 : i32
    %c0_i32_0 = arith.constant 0 : i32
    return %arg1, %c0_i32 : i32, i32
  }
  func.func @transform_1(%arg0: i32, %arg1: i32) -> (i32, i32) {
    %c0_i32 = arith.constant 0 : i32
    %c0_i32_0 = arith.constant 0 : i32
    return %c0_i32, %arg0 : i32, i32
  }
  func.func @transform_2(%arg0: i32, %arg1: i32) -> (i32, i32) {
    %c0_i32 = arith.constant 0 : i32
    %c0_i32_0 = arith.constant 0 : i32
    return %c0_i32, %arg0 : i32, i32
  }
  func.func @transform_3(%arg0: i32, %arg1: i32) -> (i32, i32) {
    %c0_i32 = arith.constant 0 : i32
    return %arg1, %arg0 : i32, i32
  }
}

</mosaic_0001>

<bundles_post_ra>
// kernel: tpu_custom_call.1
= control target key start
LH: loop header
LB: loop body
LE: loop exit
PB: predicated region body
PF: predicated region fallthrough
CT: control target
= control target key end

     0   :  { %8 = vsyncpa [#allocation3], 0  ;;  %s256_s0 = inlined_call_operand.hbm [shape: f32[16,32], index: 0, kind: input, shape index: {}]   ;;  %s257_s1 = inlined_call_operand.hbm [shape: bf16[32,32], index: 1, kind: input, shape index: {}]   ;;  %s258_s2 = inlined_call_operand.vmem [shape: f32[1,32], index: 2, kind: input, shape index: {}]   ;;  %s259_s3 = inlined_call_operand.hbm [shape: bf16[16,32], index: 3, kind: output, shape index: {}]  }
   0x1   :  { %9 = vsyncpa [#allocation6], 0 }
   0x2   :  { %10 = vsyncpa [#allocation4], 0  ;;  %s15_s14 = sshll.u32 %s256_s0, 4  ;;  %s211_s15 = smov [#allocation2]   ;;  %s16_s14 = int_to_ptr.hbm [resolvable:$true] %s15_s14 }
   0x3   :  { %s17_s16 = sshll.u32 %s211_s15, 4  ;;  %s28_s19 = sshll.u32 %s257_s1, 4  ;;  %s18_s16 = int_to_ptr.vmem [resolvable:$true] %s17_s16  ;;  %s29_s19 = int_to_ptr.hbm [resolvable:$true] %s28_s19 }
   0x4   :  { %s212_s20 = smov 128   ;;  %s213_s21 = smov 8  }
   0x5   :  { %23 = dma.hbm_to_vmem [thread:$0]  %s16_s14, 256, %s18_s16, [#allocation3], %s212_s20, %s212_s20, %s213_s21  }
   0x6   :  { %s214_s22 = smov [#allocation5]   ;;  %s215_s24 = smov 64  }
   0x7   :  { %s30_s23 = sshll.u32 %s214_s22, 4  ;;  %s216_s25 = smov 4   ;;  %s31_s23 = int_to_ptr.vmem [resolvable:$true] %s30_s23 }
   0x8   :  { %36 = dma.hbm_to_vmem [thread:$0]  %s29_s19, 256, %s31_s23, [#allocation6], %s215_s24, %s215_s24, %s216_s25  }
   0x9   :  { %205 = dma.done.wait [#allocation3], 256  }
   0xa   :  { %206 = vsyncadd [#allocation3], 4294967040 }
   0xb   :  { %207 = dma.done.wait [#allocation6], 256  }
   0xc   :  { %208 = vsyncadd [#allocation6], 4294967040  ;;  %v124_v0 = vld [vmem:[#allocation5 + $0x8] sm:$0xff]  ;;  %v123_v1 = vld [vmem:[#allocation5] sm:$0xff]  ;;  %vm71_vm0 = vcmask 261120   ;;  %vm91_vm1 = vcmask 257024  }
   0xd   :  { %81 = vmatpush.bf16.msra.mxu0 %v124_v0  ;;  %v48_v2 = vld [vmem:[#allocation2] sm:$0xff]  ;;  %v49_v3 = vld [vmem:[#allocation2 + $0x8] sm:$0xff]  ;;  %s217_s26 = smov [#allocation7]   ;;  %s100_s30 = sshll.u32 %s259_s3, 4  ;;  %s101_s30 = int_to_ptr.hbm [resolvable:$true] %s100_s30 }
   0xe   :  { %v50_v4 = vpack.c.bf16 %v49_v3, %v48_v2  ;;  %v132_v5 = vld [vmem:[%s258_s2] ss:$0 sm:$0xff]  ;;  %s98_s27 = sshll.u32 %s217_s26, 4  ;;  %s99_s27 = int_to_ptr.vmem [resolvable:$true] %s98_s27 }
  0x11   :  { %82 = vmatpush.bf16.msra.mxu0 %v123_v1 }
  0x14   :  { %122 = vmatmul.msk.bf16.vlgmr.msra.gmra.mxu0 %vm71_vm0, %v50_v4 }
  0x91   :  { %v84_v6 = vpop.f32.mrf.mxu0 }
  0x92   :  { %v85_v7 = vadd.f32 %v132_v5, %v84_v6 }
  0x94   :  { %v89_v8 = vpack.c.bf16 %v85_v7, %v85_v7 }
  0x96   :  { %92 = vst.msk [vmem:[#allocation7] sm:$0xf] %vm91_vm1, %v89_v8 }
  0x99   :  { %v86_v9 = vpop.f32.mrf.mxu0 }
  0x9a   :  { %v87_v10 = vadd.f32 %v132_v5, %v86_v9 }
  0x9c   :  { %v90_v11 = vpack.c.bf16 %v87_v10, %v87_v10 }
  0x9e   :  { %93 = vst.msk [vmem:[#allocation7 + $0x4] sm:$0xf] %vm91_vm1, %v90_v11 }
  0x9f   :  { %106 = dma.vmem_to_hbm [thread:$0]  %s99_s27, 128, %s101_s30, [#allocation4], %s215_s24, %s215_s24, %s216_s25  }
  0xa0   :  { %209 = dma.done.wait [#allocation4], 128  }
  0xa1   :  { %210 = vsyncadd [#allocation4], 4294967168 }
  0xa2   :  { %111 = vsyncpa [#allocation3], 1 }
  0xa3   :  { %112 = vsyncpa [#allocation6], 1 }
  0xa4   :  { %113 = vsyncpa [#allocation4], 1 }

</bundles_post_ra>
